<compile_context>
chip_gen: v7x
topology: tpu7x:2x2x1
jax: 0.10.0
libtpu: 0.0.40
codegen_flags: <defaults>
</compile_context>

<pallas_src>
import functools

import jax
import jax.numpy as jnp
from jax.experimental import pallas as pl
from jax.experimental.pallas import tpu as pltpu

_LANE = 128
_SUBLANE = 8


def _vmem_budgets():
    """(tile_budget, fused_block_budget, vmem_limit) in bytes, generation-aware when possible."""
    try:
        phys = int(pltpu.get_tpu_info().vmem_capacity_bytes)
    except Exception:  # be conservative (v7x has only 64 MiB physical VMEM per TC)
        phys = 64 << 20
    vmem_limit = min(phys - (16 << 20), 100 << 20)   # 48 MiB on v7x, 100 MiB on v5e/v6e
    tile_budget = vmem_limit // 2                    # double-buffered residency target
    fused_budget = vmem_limit // 3                   # per-batch fused-block target
    return tile_budget, fused_budget, vmem_limit


_TILE_BUDGET, _FUSED_BUDGET, _VMEM_LIMIT = _vmem_budgets()


def _round_up(n, m):
    return -(-n // m) * m


def _largest_aligned_divisor(n, align, cap):
    """Largest multiple-of-`align` divisor of n that is <= cap, else None."""
    start = (min(n, cap) // align) * align
    for t in range(start, 0, -align):
        if n % t == 0:
            return t
    return None


def _pick_pass1_hw_tile(hw, c, itemsize):
    """HW tile for the (1, C, tile_hw) gate-reduction block; only x is pipelined here."""
    c_pad = _round_up(c, _SUBLANE)
    cap = max(_LANE, _TILE_BUDGET // (2 * c_pad * itemsize))
    if hw <= cap:
        return hw
    t = _largest_aligned_divisor(hw, _LANE, cap)
    # TODO(synk): split on non-divisor boundaries (masked tail tile) instead of full-extent fallback.
    return t if t is not None else hw


def _pick_rows_tile(rows, itemsize):
    """Sublane-row tile for the lane-dense (1, r_tile, 128) scale block (x + pre + post pipelined)."""
    cap = max(_SUBLANE, _TILE_BUDGET // (6 * _LANE * itemsize))
    if rows <= cap:
        return rows
    t = _largest_aligned_divisor(rows, _SUBLANE, cap)
    return t if t is not None else rows


def _pick_pass2_structured_tile(hw, c, itemsize):
    """HW tile for the fallback (1, C, tile_hw) scale block when C*HW has no 128 divisor."""
    c_pad = _round_up(c, _SUBLANE)
    cap = max(_LANE, _TILE_BUDGET // (6 * c_pad * itemsize))
    if hw <= cap:
        return hw
    t = _largest_aligned_divisor(hw, _LANE, cap)
    return t if t is not None else hw


# ---------------- pass 1: global-avg-pool -> Linear(C,2) -> sigmoid -> threshold ----------------

def _gate_kernel(x_ref, wg_ref, bg_ref, sc_ref, acc_ref, *, inv_hw):
    """grid=(B, n_hw_tiles). Accumulate per-(b, c) spatial sums; emit [s_sum, s_sum*cnt] at last t."""
    t = pl.program_id(1)

    @pl.when(t == 0)
    def _():
        acc_ref[...] = jnp.zeros_like(acc_ref)

    # Partial spatial sum for this HW tile (widen to f32 in-kernel; x may be bf16 on the HBM side).
    acc_ref[...] += jnp.sum(x_ref[...].astype(jnp.float32), axis=-1)       # [1, C]

    @pl.when(t == pl.num_programs(1) - 1)
    def _():
        pooled = acc_ref[...] * inv_hw                                      # global avg pool, [1, C]
        # Tiny gate matmul; HIGHEST precision so bf16 MXU passes can't flip the 0.5 threshold.
        logits = jax.lax.dot_general(
            pooled, wg_ref[...],
            dimension_numbers=(((1,), (0,)), ((), ())),
            precision=jax.lax.Precision.HIGHEST,
            preferred_element_type=jnp.float32)                             # [1, 2]
        score = jax.nn.sigmoid(logits + bg_ref[...])                        # [1, 2]
        mask = (score > 0.5).astype(jnp.float32)                            # threshold protocol (strict >)
        s = jnp.sum(mask * score, axis=-1, keepdims=True)                   # s_sum          [1, 1]
        c = jnp.sum(mask, axis=-1, keepdims=True)                           # routed count   [1, 1]
        # Emit [s_sum, s_sum*cnt] without a concatenate: col = [0, 1] selects s vs s*c.
        col = jax.lax.broadcasted_iota(jnp.int32, (1, 2), 1).astype(jnp.float32)
        sc_ref[...] = (s * (1.0 + col * (c - 1.0))).reshape(1, 1, 2)


# ---------------- pass 2: identity experts + weighted combine == per-batch scaling --------------

def _scale_kernel(sc_ref, x_ref, pre_ref, post_ref):
    """grid=(B, n_tiles). sc_ref is a [B, 2] SMEM table of (s_sum, s_sum*cnt) per batch cell."""
    b = pl.program_id(0)
    s = sc_ref[b, 0]                          # s_sum
    sxc = sc_ref[b, 1]                        # s_sum * cnt  (exact: cnt in {0, 1, 2})
    xt = x_ref[...].astype(jnp.float32)       # widen once (free: kernel is HBM-bound)
    pre_ref[...] = (xt * s).astype(pre_ref.dtype)
    post_ref[...] = (xt * sxc).astype(post_ref.dtype)


# ---------------- fused single-pass kernel (small activations: x block stays resident) ----------

def _fused_kernel(x_ref, wg_ref, bg_ref, pre_ref, post_ref, *, inv_hw):
    xt = x_ref[...].astype(jnp.float32)                                     # (1, C, HW)
    pooled = jnp.sum(xt, axis=-1) * inv_hw                                  # (1, C)
    logits = jax.lax.dot_general(
        pooled, wg_ref[...],
        dimension_numbers=(((1,), (0,)), ((), ())),
        precision=jax.lax.Precision.HIGHEST,
        preferred_element_type=jnp.float32)                                 # (1, 2)
    score = jax.nn.sigmoid(logits + bg_ref[...])
    mask = (score > 0.5).astype(jnp.float32)
    s = jnp.sum(mask * score, axis=-1, keepdims=True).reshape(1, 1, 1)      # s_sum
    c = jnp.sum(mask, axis=-1, keepdims=True).reshape(1, 1, 1)              # cnt
    y = xt * s
    pre_ref[...] = y.astype(pre_ref.dtype)
    post_ref[...] = (y * c).astype(post_ref.dtype)


# ---------------- wrappers -----------------------------------------------------------------------


def _weighted_branch_route_fused(x, w_gate, b_gate):
    B, C, H, W = x.shape
    HW = H * W
    x3 = x.reshape(B, C, HW)                                  # free contiguous reshape, caller dtype
    wg = w_gate.astype(jnp.float32)
    bg = b_gate.astype(jnp.float32).reshape(1, 2)

    pre3, post3 = pl.pallas_call(
        functools.partial(_fused_kernel, inv_hw=1.0 / HW),
        out_shape=(jax.ShapeDtypeStruct((B, C, HW), x.dtype),
                   jax.ShapeDtypeStruct((B, C, HW), x.dtype)),
        grid=(B,),
        in_specs=[
            pl.BlockSpec((1, C, HW), lambda b: (b, 0, 0)),
            pl.BlockSpec((C, 2), lambda b: (0, 0)),
            pl.BlockSpec((1, 2), lambda b: (0, 0)),
        ],
        out_specs=(pl.BlockSpec((1, C, HW), lambda b: (b, 0, 0)),
                   pl.BlockSpec((1, C, HW), lambda b: (b, 0, 0))),
        compiler_params=pltpu.CompilerParams(
            dimension_semantics=("parallel",),
            vmem_limit_bytes=_VMEM_LIMIT),
    )(x3, wg, bg)
    return pre3.reshape(B, C, H, W), post3.reshape(B, C, H, W)


def _weighted_branch_route_two_pass(x, w_gate, b_gate):
    B, C, H, W = x.shape
    HW = H * W
    N = C * HW
    itemsize = jnp.dtype(x.dtype).itemsize

    x3 = x.reshape(B, C, HW)                                  # free contiguous reshape, caller dtype
    wg = w_gate.astype(jnp.float32)
    bg = b_gate.astype(jnp.float32).reshape(1, 2)

    # ---- pass 1: per-batch routing table sc_tab[b] = (s_sum, s_sum*cnt) ------------------------
    tile_hw = _pick_pass1_hw_tile(HW, C, itemsize)
    n_hw_tiles = HW // tile_hw

    sc3 = pl.pallas_call(
        functools.partial(_gate_kernel, inv_hw=1.0 / HW),
        out_shape=jax.ShapeDtypeStruct((B, 1, 2), jnp.float32),
        grid=(B, n_hw_tiles),
        in_specs=[
            pl.BlockSpec((1, C, tile_hw), lambda b, t: (b, 0, t)),
            pl.BlockSpec((C, 2), lambda b, t: (0, 0)),
            pl.BlockSpec((1, 2), lambda b, t: (0, 0)),
        ],
        out_specs=pl.BlockSpec((1, 1, 2), lambda b, t: (b, 0, 0)),
        scratch_shapes=[pltpu.VMEM((1, C), jnp.float32)],
        compiler_params=pltpu.CompilerParams(
            dimension_semantics=("parallel", "arbitrary"),
            vmem_limit_bytes=_VMEM_LIMIT),
    )(x3, wg, bg)
    sc_tab = sc3.reshape(B, 2)

    # ---- pass 2: streaming per-batch scaling, lane-dense layout when possible ------------------
    if N % _LANE == 0:
        rows = N // _LANE
        r_tile = _pick_rows_tile(rows, itemsize)
        xs = x.reshape(B, rows, _LANE)                        # free reshape: dense sublanes + lanes
        blk = (1, r_tile, _LANE)
        grid2 = (B, rows // r_tile)
    else:
        # Fallback for shapes with no 128-divisor payload (e.g. 7x7 maps): full-lane masked stores.
        tile2 = _pick_pass2_structured_tile(HW, C, itemsize)
        xs = x3
        blk = (1, C, tile2)
        grid2 = (B, HW // tile2)

    pre, post = pl.pallas_call(
        _scale_kernel,
        out_shape=(jax.ShapeDtypeStruct(xs.shape, x.dtype),
                   jax.ShapeDtypeStruct(xs.shape, x.dtype)),
        grid=grid2,
        in_specs=[
            pl.BlockSpec(memory_space=pltpu.MemorySpace.SMEM),   # sc_tab [B, 2], one SMEM copy
            pl.BlockSpec(blk, lambda b, t: (b, 0, t)),           # x tile
        ],
        out_specs=(pl.BlockSpec(blk, lambda b, t: (b, 0, t)),
                   pl.BlockSpec(blk, lambda b, t: (b, 0, t))),
        compiler_params=pltpu.CompilerParams(
            dimension_semantics=("parallel", "parallel"),
            vmem_limit_bytes=_VMEM_LIMIT),
        # TODO(synk): add input_output_aliases={1: 0} when the caller allows x to be consumed in-place.
    )(sc_tab, xs)

    return pre.reshape(B, C, H, W), post.reshape(B, C, H, W)


def weighted_branch_route(x, w_gate, b_gate):
    """x: [B, C, H, W]; w_gate: [C, 2]; b_gate: [2] -> (pre_x, post_x), both [B, C, H, W] in x.dtype."""
    B, C, H, W = x.shape
    HW = H * W
    itemsize = jnp.dtype(x.dtype).itemsize
    # Fused fast path: per-batch block (x + pre + post, double-buffered, with layout padding).
    fused_bytes = 6 * _round_up(C, _SUBLANE) * _round_up(HW, _LANE) * itemsize
    if fused_bytes <= _FUSED_BUDGET:
        return _weighted_branch_route_fused(x, w_gate, b_gate)
    return _weighted_branch_route_two_pass(x, w_gate, b_gate)


# ---------------- pure-JAX reference --------------------------------------------------------------

def reference(x, w_gate, b_gate):
    B, C, H, W = x.shape
    pooled = x.reshape(B, C, -1).astype(jnp.float32).mean(-1)                # [B, C]
    logits = jnp.einsum("bc,cp->bp", pooled, w_gate.astype(jnp.float32),
                        precision=jax.lax.Precision.HIGHEST) + b_gate        # [B, 2]
    score = jax.nn.sigmoid(logits)
    mask = score > 0.5
    s_sum = jnp.sum(jnp.where(mask, score, 0.0), axis=1)                     # [B]
    cnt = jnp.sum(mask, axis=1).astype(jnp.float32)                          # [B]
    pre_x = x * s_sum[:, None, None, None]
    post_x = x * (s_sum * cnt)[:, None, None, None]
    return pre_x.astype(x.dtype), post_x.astype(x.dtype)


if __name__ == "__main__":
    key = jax.random.PRNGKey(0)
    kx, kw, kb, kx2 = jax.random.split(key, 4)

    B, C, H, W = 2, 4, 16, 16
    x = jax.random.normal(kx, (B, C, H, W), dtype=jnp.float32)
    w_gate = jax.random.normal(kw, (C, 2), dtype=jnp.float32) * 0.5          # Linear(C, 2) weight
    b_gate = jax.random.normal(kb, (2,), dtype=jnp.float32) * 0.1            # Linear(C, 2) bias

    pre_ref, post_ref = reference(x, w_gate, b_gate)

    # Dispatcher (small activation -> fused single-pass kernel).
    pre_x, post_x = weighted_branch_route(x, w_gate, b_gate)
    jax.block_until_ready((pre_x, post_x))
    assert jnp.allclose(pre_x, pre_ref, atol=1e-5, rtol=1e-5)
    assert jnp.allclose(post_x, post_ref, atol=1e-5, rtol=1e-5)

    # Two-pass path, lane-dense flat layout (C*H*W % 128 == 0).
    pre2, post2 = _weighted_branch_route_two_pass(x, w_gate, b_gate)
    jax.block_until_ready((pre2, post2))
    assert jnp.allclose(pre2, pre_ref, atol=1e-5, rtol=1e-5)
    assert jnp.allclose(post2, post_ref, atol=1e-5, rtol=1e-5)

    # Two-pass path, structured fallback (7x7 feature maps: C*H*W % 128 != 0).
    x_odd = jax.random.normal(kx2, (B, C, 7, 7), dtype=jnp.float32)
    pre_ref3, post_ref3 = reference(x_odd, w_gate, b_gate)
    pre3, post3 = _weighted_branch_route_two_pass(x_odd, w_gate, b_gate)
    jax.block_until_ready((pre3, post3))
    assert jnp.allclose(pre3, pre_ref3, atol=1e-5, rtol=1e-5)
    assert jnp.allclose(post3, post_ref3, atol=1e-5, rtol=1e-5)

    print("KERNEL_OK")
</pallas_src>

<mosaic_0001>
module attributes {stable_mosaic.version = 11 : i64} {
  func.func @_fused_kernel(%arg0: i32, %arg1: memref<1x4x256xf32, #tpu.memory_space<vmem>>, %arg2: memref<4x2xf32, #tpu.memory_space<vmem>>, %arg3: memref<1x2xf32, #tpu.memory_space<vmem>>, %arg4: memref<1x4x256xf32, #tpu.memory_space<vmem>>, %arg5: memref<1x4x256xf32, #tpu.memory_space<vmem>>) attributes {dimension_semantics = [#tpu.dimension_semantics<parallel>], iteration_bounds = array<i64: 2>, scalar_prefetch = 0 : i64, scratch_operands = 0 : i64, tpu.core_type = #tpu.core_type<tc>, window_params = [{transform_indices = @transform_0, window_bounds = array<i64: 1, 4, 256>}, {pipeline_mode = #tpu.pipeline_mode<synchronous>, transform_indices = @transform_1, window_bounds = array<i64: 4, 2>}, {pipeline_mode = #tpu.pipeline_mode<synchronous>, transform_indices = @transform_2, window_bounds = array<i64: 1, 2>}, {transform_indices = @transform_3, window_bounds = array<i64: 1, 4, 256>}, {transform_indices = @transform_4, window_bounds = array<i64: 1, 4, 256>}]} {
    %c0 = arith.constant 0 : index
    %c0_0 = arith.constant 0 : index
    %c0_1 = arith.constant 0 : index
    %0 = vector.load %arg1[%c0, %c0_0, %c0_1] : memref<1x4x256xf32, #tpu.memory_space<vmem>>, vector<1x4x256xf32>
    %cst = arith.constant dense<0.000000e+00> : vector<1x4xf32>
    %1 = vector.multi_reduction <add>, %0, %cst [2] : vector<1x4x256xf32> to vector<1x4xf32>
    %cst_2 = arith.constant 3.906250e-03 : f32
    %2 = vector.broadcast %cst_2 : f32 to vector<1x4xf32>
    %3 = arith.mulf %1, %2 : vector<1x4xf32>
    %c0_3 = arith.constant 0 : index
    %c0_4 = arith.constant 0 : index
    %4 = vector.load %arg2[%c0_3, %c0_4] : memref<4x2xf32, #tpu.memory_space<vmem>>, vector<4x2xf32>
    %cst_5 = arith.constant dense<0.000000e+00> : vector<1x2xf32>
    %5 = tpu.matmul %3, %4, %cst_5 {dimension_numbers = #tpu.dot_dimension_numbers<[1], [0], [0], [1], [0, 0, 1, 1], [], []>, precision = #tpu.contract_precision<fp32>} : vector<1x4xf32>, vector<4x2xf32>, vector<1x2xf32> -> vector<1x2xf32>
    %c0_6 = arith.constant 0 : index
    %c0_7 = arith.constant 0 : index
    %6 = vector.load %arg3[%c0_6, %c0_7] : memref<1x2xf32, #tpu.memory_space<vmem>>, vector<1x2xf32>
    %7 = arith.addf %5, %6 : vector<1x2xf32>
    %8 = arith.negf %7 : vector<1x2xf32>
    %9 = math.exp %8 : vector<1x2xf32>
    %cst_8 = arith.constant 1.000000e+00 : f32
    %10 = vector.broadcast %cst_8 : f32 to vector<1x2xf32>
    %11 = arith.addf %10, %9 : vector<1x2xf32>
    %12 = arith.divf %10, %11 : vector<1x2xf32>
    %cst_9 = arith.constant 5.000000e-01 : f32
    %13 = vector.broadcast %cst_9 : f32 to vector<1x2xf32>
    %14 = arith.cmpf ogt, %12, %13 : vector<1x2xf32>
    %15 = arith.extui %14 : vector<1x2xi1> to vector<1x2xi32>
    %16 = arith.sitofp %15 : vector<1x2xi32> to vector<1x2xf32>
    %17 = arith.mulf %16, %12 : vector<1x2xf32>
    %cst_10 = arith.constant dense<0.000000e+00> : vector<1xf32>
    %18 = vector.multi_reduction <add>, %17, %cst_10 [1] : vector<1x2xf32> to vector<1xf32>
    %19 = vector.shape_cast %18 : vector<1xf32> to vector<1x1xf32>
    %20 = vector.shape_cast %19 : vector<1x1xf32> to vector<1x1x1xf32>
    %cst_11 = arith.constant dense<0.000000e+00> : vector<1xf32>
    %21 = vector.multi_reduction <add>, %16, %cst_11 [1] : vector<1x2xf32> to vector<1xf32>
    %22 = vector.shape_cast %21 : vector<1xf32> to vector<1x1xf32>
    %23 = vector.shape_cast %22 : vector<1x1xf32> to vector<1x1x1xf32>
    %24 = vector.broadcast %20 : vector<1x1x1xf32> to vector<1x4x256xf32>
    %25 = arith.mulf %0, %24 : vector<1x4x256xf32>
    %c0_12 = arith.constant 0 : index
    %c0_13 = arith.constant 0 : index
    %c0_14 = arith.constant 0 : index
    %26 = vector.load %arg4[%c0_12, %c0_13, %c0_14] : memref<1x4x256xf32, #tpu.memory_space<vmem>>, vector<1x4x256xf32>
    tpu.vector_store %arg4[%c0_12, %c0_13, %c0_14], %25 {strides = array<i32>} : memref<1x4x256xf32, #tpu.memory_space<vmem>>, vector<1x4x256xf32>,
    %27 = vector.broadcast %23 : vector<1x1x1xf32> to vector<1x4x256xf32>
    %28 = arith.mulf %25, %27 : vector<1x4x256xf32>
    %c0_15 = arith.constant 0 : index
    %c0_16 = arith.constant 0 : index
    %c0_17 = arith.constant 0 : index
    %29 = vector.load %arg5[%c0_15, %c0_16, %c0_17] : memref<1x4x256xf32, #tpu.memory_space<vmem>>, vector<1x4x256xf32>
    tpu.vector_store %arg5[%c0_15, %c0_16, %c0_17], %28 {strides = array<i32>} : memref<1x4x256xf32, #tpu.memory_space<vmem>>, vector<1x4x256xf32>,
    return
  }
  func.func @transform_0(%arg0: i32) -> (i32, i32, i32) {
    %c0_i32 = arith.constant 0 : i32
    %c0_i32_0 = arith.constant 0 : i32
    %c0_i32_1 = arith.constant 0 : i32
    return %arg0, %c0_i32, %c0_i32_0 : i32, i32, i32
  }
  func.func @transform_1(%arg0: i32) -> (i32, i32) {
    %c0_i32 = arith.constant 0 : i32
    %c0_i32_0 = arith.constant 0 : i32
    %c0_i32_1 = arith.constant 0 : i32
    return %c0_i32, %c0_i32_0 : i32, i32
  }
  func.func @transform_2(%arg0: i32) -> (i32, i32) {
    %c0_i32 = arith.constant 0 : i32
    %c0_i32_0 = arith.constant 0 : i32
    %c0_i32_1 = arith.constant 0 : i32
    return %c0_i32, %c0_i32_0 : i32, i32
  }
  func.func @transform_3(%arg0: i32) -> (i32, i32, i32) {
    %c0_i32 = arith.constant 0 : i32
    %c0_i32_0 = arith.constant 0 : i32
    %c0_i32_1 = arith.constant 0 : i32
    return %arg0, %c0_i32, %c0_i32_0 : i32, i32, i32
  }
  func.func @transform_4(%arg0: i32) -> (i32, i32, i32) {
    %c0_i32 = arith.constant 0 : i32
    %c0_i32_0 = arith.constant 0 : i32
    %c0_i32_1 = arith.constant 0 : i32
    return %arg0, %c0_i32, %c0_i32_0 : i32, i32, i32
  }
}

</mosaic_0001>

<bundles_post_ra>
// kernel: tpu_custom_call.1
= control target key start
LH: loop header
LB: loop body
LE: loop exit
PB: predicated region body
PF: predicated region fallthrough
CT: control target
= control target key end

     0   :  { %10 = vsyncpa [#allocation3], 0  ;;  %s1376_s0 = inlined_call_operand.hbm [shape: f32[2,4,256], index: 0, kind: input, shape index: {}]   ;;  %s1377_s1 = inlined_call_operand.vmem [shape: f32[4,2], index: 1, kind: input, shape index: {}]   ;;  %s1378_s2 = inlined_call_operand.vmem [shape: f32[1,2], index: 2, kind: input, shape index: {}]   ;;  %s1379_s3 = inlined_call_operand.hbm [shape: f32[2,4,256], index: 3, kind: output, shape index: {0}]   ;;  %s1380_s4 = inlined_call_operand.hbm [shape: f32[2,4,256], index: 4, kind: output, shape index: {1}]  }
   0x1   :  { %12 = vsyncpa [#allocation3 + $0x1], 0 }
   0x2   :  { %13 = vsyncpa [#allocation4], 0 }
   0x3   :  { %15 = vsyncpa [#allocation4 + $0x1], 0 }
   0x4   :  { %16 = vsyncpa [#allocation7], 0 }
   0x5   :  { %18 = vsyncpa [#allocation7 + $0x1], 0  ;;  %s1155_s15 = smov 0   ;;  %s1157_s16 = smov 0  }
   0x6   :  { %s1159_s17 = smov 0   ;;  %s1161_s18 = smov 0  }
   0x7 LB: > { %s1176_s19 = sadd.s32 4294967295, %s1123_s18   ;;  %s862_s20 = sadd.s32 4294967294, %s1123_s18   ;;  %s1123_s18 = sphi %s1161_s18, %s1395_s18   ;;  %s1119_s17 = sphi %s1159_s17, %s1394_s17   ;;  %s1115_s16 = sphi %s1157_s16, %s1393_s16   ;;  %s1111_s15 = sphi %s1155_s15, %s1392_s15  }
   0x8   : > { %s1180_s21 = sadd.s32 1, %s1123_s18   ;;  %s31_s22 = sadd.s32 1, %s1119_s17 }
   0x9   : > { %s28_s23 = ssub.s32 %s1123_s18, %s1180_s21  ;;  %p38_p0 = scmp.ne.s32.totalorder %s1119_s17, %s1115_s16 }
   0xa   : > { %p29_p1 = scmp.eq.s32.totalorder %s28_s23, 0  ;;  %p39_p2 = scmp.eq.s32.totalorder %s1123_s18, 0 }
   0xb   : > { %p44_p3 = scmp.ne.s32.totalorder %s1115_s16, %s1111_s15  ;;  %p45_p4 = scmp.eq.s32.totalorder %s1176_s19, 0 }
   0xc   : > { %s1192_s24 = scalar_select %p29_p1, %s1119_s17, %s31_s22  }
   0xd   : > { %p1194_p5 = por %p39_p2, %p38_p0  ;;  %p1198_p6 = por %p45_p4, %p44_p3 }
   0xe   : > { %p110_p7 = scmp.eq.s32.totalorder %s1176_s19, 1  ;;  %p116_p8 = scmp.eq.s32.totalorder %s862_s20, 1 }
   0xf   : > { %p954_p10 = scmp.lt.s32.totalorder %s1123_s18, 2  ;;  %s168_s29 = sand.u32 1, %s1119_s17  }
  0x10   : > { %p1205_p11 = por %p110_p7, %p38_p0  ;;  %p1209_p12 = por %p116_p8, %p44_p3 }
  0x11   : > { %s882_s30 = sshll.u32 %s1123_s18, 7  ;;  %s865_s5 = sshll.u32 %s168_s29, 3 }
  0x12   : > { %s1384_s27 = scalar_select %p1205_p11, 1, 0 }
  0x13   : > { %s1385_s28 = scalar_select %p1209_p12, 1, 0 }
  0x14   : > { %s1218_s8 = scalar_lea.hbm %s1376_s0, %s882_s30  ;;  %s172_s9 = scalar_lea.vmem [#allocation2], %s865_s5 }
  0x15   : > { %s180_s10 = sshll.u32 %s172_s9, 4  ;;  %p1222_p13 = pnand %p954_p10, %p1194_p5  ;;  %s1226_s10 = int_to_ptr.vmem [resolvable:$true] %s180_s10 }
  0x16   : > { %s169_s12 = scalar_lea.sflag [#allocation3], %s168_s29  ;;  %s995_s13 = scalar_lea.hbm %s1218_s8, 128 }
  0x17   : > { %p996_p2 = scmp.ne.s32.totalorder %s1218_s8, %s995_s13  ;;  %p997_p3 = pneg %p1222_p13 }
  0x18   : > { %s1000_s22 = scalar_lea.hbm %s1376_s0, 256  ;;  %p1001_p5 = scmp.lt.u32.totalorder %s1218_s8, %s1376_s0 }
  0x19   : > { %p998_p4 = pnand %p997_p3, %p996_p2  ;;  %p1002_p8 = scmp.lt.u32.totalorder %s1000_s22, %s995_s13 }
  0x1a   : > { %p1004_p9 = scmp.lt.u32.totalorder %s995_s13, %s1218_s8 }
  0x1b   : > { %p999_p7 = pneg %p998_p4  ;;  %p1003_p10 = por %p1002_p8, %p1001_p5 }
  0x1d   : > { %p1005_p0 = por %p1004_p9, %p1003_p10 }
  0x1f   : > { %p1006_p1 = pnand %p1005_p0, %p999_p7 }
  0x21   : > { %1009 = shalt.err (!%p1006_p1)
}
  0x22   : > { %s1010_s29 = scalar_lea.vmem %s1226_s10, 128  ;;  %s1125_s30 = smov [#allocation2]  }
  0x23   : > { %p1011_p2 = scmp.ne.s32.totalorder %s1226_s10, %s1010_s29  ;;  %s1015_s5 = sshll.u32 %s1125_s30, 4  ;;  %s1016_s5 = int_to_ptr.vmem [resolvable:$false] %s1015_s5 }
  0x24   : > { %s1017_s6 = scalar_lea.vmem %s1016_s5, 256  ;;  %p1018_p11 = scmp.lt.s32.totalorder %s1226_s10, %s1016_s5 }
  0x25   : > { %p1013_p4 = pnand %p1011_p2, %p997_p3  ;;  %p1019_p5 = scmp.lt.s32.totalorder %s1017_s6, %s1010_s29 }
  0x27   : > { %p1014_p12 = pneg %p1013_p4  ;;  %p1020_p8 = por %p1019_p5, %p1018_p11 }
  0x29   : > { %p1021_p9 = pnand %p1020_p8, %p1014_p12 }
  0x2b   : > { %1024 = shalt.err (!%p1021_p9)
}
  0x2c   : > { %946 = dma.hbm_to_vmem [thread:$0]  (!%p1222_p13), %s1218_s8, 128, %s1226_s10, %s169_s12  }
  0x2d   : > { %p1387_p0 = scmp.lt.s32.totalorder %s1123_s18, 3  ;;  %p1388_p1 = scmp.ge.s32.totalorder %s1123_s18, 1 }
  0x2f   : > { %p186_p3 = pnand %p1388_p1, %p1387_p0 }
  0x30   : > { %s1260_s7 = sand.u32 (!%p186_p3), 1, %s1115_s16  }
  0x31   : > { %189 = sbr.rel (%p186_p3) target bundleno = 666 (0x29a), region = 32  ;;  %s1263_s9 = sshll.u32 (!%p186_p3), %s1260_s7, 3 }
  0x32   : > { %s192_s13 = scalar_lea.sflag (!%p186_p3), [#allocation3], %s1260_s7  ;;  %s195_s11 = scalar_lea.vmem (!%p186_p3), [#allocation2], %s1263_s9 }
  0x38   : > { %1098 = dma.done.wait (%p1198_p6), %s192_s13, 128  }
  0x39   : > { %1100 = vsyncadd (%p1198_p6), %s192_s13, 4294967168  ;;  %vm229_vm0 = vcmask 1043456   ;;  %v1271_v0 = vld [vmem:[%s195_s11] sm:$0xff]  ;;  %v1126_v8 = vmov 0.0   ;;  %vm1127_vm1 = vmmov 0   ;;  %v239_v9 = vlaneseq  ;;  %s883_s14 = sshll.u32 %s1176_s19, 7 }
  0x3a   : > { %v227_v1 = vcombine.high %v1271_v0, %v1271_v0  ;;  %v230_v2 = vsel %vm229_vm0, %v1271_v0, 0.0  ;;  %v236_v5 = vld [vmem:[%s1377_s1] sm:$0xf]  ;;  %912 = vmatprep.subr.mxu0 %v1126_v8  ;;  %914 = vmatprep.mubr.msk.f32.mxu0 %vm1127_vm1, %v1126_v8  ;;  %vm245_vm2 = vcmask 31744   ;;  %vm707_vm3 = vcmask 8192   ;;  %s217_s20 = scalar_lea.vmem [#allocation5], %s1263_s9  ;;  %s1301_s5 = scalar_lea.hbm %s1379_s3, %s883_s14 }
  0x3b   : > { %v249_v6 = vsel %vm229_vm0, %v236_v5, 0  ;;  %897 = vmatprep.subr.mxu1 %v1126_v8  ;;  %899 = vmatprep.mubr.msk.f32.mxu1 %vm1127_vm1, %v1126_v8  ;;  %v240_v10 = vand.u32 127, %v239_v9  ;;  %v1281_v11 = vshrl.u32 %v239_v9, 7  ;;  %v237_v28 = vld [vmem:[%s1378_s2] sm:$0x1]  ;;  %s746_s22 = sshll.u32 %s217_s20, 4  ;;  %s1308_s13 = scalar_lea.hbm %s1380_s4, %s883_s14  ;;  %s1303_s22 = int_to_ptr.vmem [resolvable:$true] %s746_s22 }
  0x3c   : > { %v231_v3 = vsel %vm229_vm0, %v227_v1, 0.0  ;;  %v252_v7 = vand.u32 4294901760, %v249_v6  ;;  %s224_s23 = scalar_lea.vmem [#allocation6], %s1263_s9  ;;  %s727_s11 = scalar_lea.sflag [#allocation4], %s1260_s7 }
  0x3d   : > { %v232_v4 = vadd.f32 %v231_v3, %v230_v2  ;;  %v243_v12 = vsub.s32 %v240_v10, %v1281_v11  ;;  %v716_v41 = vsub.s32 0, %v1281_v11  ;;  %s760_s25 = sshll.u32 %s224_s23, 4  ;;  %s1025_s8 = scalar_lea.vmem %s1303_s22, 128  ;;  %s1310_s25 = int_to_ptr.vmem [resolvable:$true] %s760_s25 }
  0x3e   : > { %913 = vmatpush3.msra.mxu0 %v252_v7  ;;  %898 = vmatpush3.msra.mxu1 %v252_v7  ;;  %v329_v14 = vsub.f32 %v249_v6, %v252_v7  ;;  %p1026_p6 = scmp.ne.s32.totalorder %s1303_s22, %s1025_s8  ;;  %p1389_p11 = scmp.ne.s32.totalorder %s1384_s27, 0 }
  0x3f   : > { %233 = vadd.xlane.f32.xlu0 %v232_v4  ;;  %902 = vmatprep.subr.mxu1 %v1126_v8  ;;  %s1128_s10 = smov [#allocation5]  }
  0x40   : > { %917 = vmatprep.subr.mxu0 %v1126_v8  ;;  %v330_v18 = vand.u32 4294901760, %v329_v14  ;;  %p1027_p12 = pnand %p1026_p6, %p1389_p11  ;;  %s1029_s26 = sshll.u32 %s1128_s10, 4  ;;  %s1030_s26 = int_to_ptr.vmem [resolvable:$false] %s1029_s26 }
  0x41   : > { %s1031_s12 = scalar_lea.vmem %s1030_s26, 256  ;;  %p1032_p7 = scmp.lt.s32.totalorder %s1303_s22, %s1030_s26 }
  0x42   : > { %v331_v21 = vsub.f32 %v329_v14, %v330_v18  ;;  %p1028_p13 = pneg %p1027_p12  ;;  %p1033_p10 = scmp.lt.s32.totalorder %s1031_s12, %s1025_s8 }
  0x44   : > { %v332_v24 = vand.u32 4294901760, %v331_v21  ;;  %p1034_p2 = por %p1033_p10, %p1032_p7 }
  0x46   : > { %p1035_p4 = pnand %p1034_p2, %p1028_p13 }
  0xcc   : > { %v234_v13 = vpop.xlane.xlu0 %233 }
  0xcd   : > { %v235_v15 = vmul.f32 0.00390625, %v234_v13 }
  0xcf   : > { %v244_v16 = vrot.slane %v235_v15, %v243_v12 }
  0xd1   : > { %v246_v17 = vsel %vm245_vm2, %v244_v16, 0 }
  0xd2   : > { %v317_v19 = vand.u32 4294901760, %v246_v17 }
  0xd4   : > { %v318_v20 = vsub.f32 %v246_v17, %v317_v19 }
  0xd6   : > { %v319_v22 = vand.u32 4294901760, %v318_v20 }
  0xd8   : > { %915 = vmatmul.mubr.f32.vlgmr.msra.gmra.mrb[0].mxu0 %v319_v22  ;;  %v320_v23 = vsub.f32 %v318_v20, %v319_v22 }
  0xd9   : > { %918 = vmatpush3.msra.mxu0 %v330_v18  ;;  %919 = vmatprep.mubr.msk.f32.mxu0 %vm1127_vm1, %v1126_v8 }
  0xda   : > { %v321_v25 = vand.u32 4294901760, %v320_v23  ;;  %922 = vmatprep.subr.mxu0 %v1126_v8 }
  0xdc   : > { %900 = vmatmul.mubr.f32.vlgmr.msra.gmra.mrb[0].mxu1 %v321_v25 }
  0xdd   : > { %903 = vmatpush3.msra.mxu1 %v332_v24  ;;  %904 = vmatprep.mubr.msk.f32.mxu1 %vm1127_vm1, %v1126_v8 }
  0xde   : > { %907 = vmatprep.subr.mxu1 %v1126_v8 }
  0xe0   : > { %920 = vmatmul.mubr.f32.vlgmr.msra.gmra.mrb[0].mxu0 %v317_v19 }
  0xe1   : > { %923 = vmatpush3.msra.mxu0 %v252_v7  ;;  %924 = vmatprep.mubr.msk.f32.mxu0 %vm1127_vm1, %v1126_v8 }
  0xe4   : > { %905 = vmatmul.mubr.f32.vlgmr.msra.gmra.mrb[0].mxu1 %v317_v19 }
  0xe5   : > { %908 = vmatpush3.msra.mxu1 %v329_v14  ;;  %909 = vmatprep.mubr.msk.f32.mxu1 %vm1127_vm1, %v1126_v8 }
  0xe8   : > { %925 = vmatmul.mubr.f32.vlgmr.msra.gmra.mrb[0].mxu0 %v317_v19 }
  0xec   : > { %910 = vmatmul.mubr.f32.vlgmr.msra.gmra.mrb[0].mxu1 %v318_v20 }
 0x1bb   : > { %v693_v26 = vpop.f32.mrb[0].mxu0 }
 0x1bc   : > { %v926_v27 = vpop.f32.mrb[1].mxu0 }
 0x1bf   : > { %v473_v29 = vpop.f32.mrb[0].mxu1 }
 0x1c0   : > { %v927_v30 = vadd.f32 %v473_v29, %v237_v28  ;;  %v911_v31 = vpop.f32.mrb[1].mxu1 }
 0x1c2   : > { %v928_v32 = vadd.f32 %v927_v30, %v693_v26 }
 0x1c4   : > { %v872_v33 = vmul.f32 -1.442695, %v928_v32 }
 0x1c6   : > { %991 = vpow2.f32 %v872_v33 }
 0x1d0   : > { %v992_v34 = vpop.eup %991 }
 0x1d1   : > { %v700_v35 = vadd.f32 1.0, %v992_v34 }
 0x1d3   : > { %993 = vrcp.f32 %v700_v35 }
 0x1dd   : > { %v994_v36 = vpop.eup %993 }
 0x1de   : > { %vm703_vm4 = vcmp.gt.f32.partialorder %v994_v36, 0.5 }
 0x1df   : > { %v873_v37 = vsel %vm703_vm4, 1.0, %v1126_v8 }
 0x1e0   : > { %v711_v38 = vsel %vm707_vm3, %v873_v37, 0.0  ;;  %v706_v39 = vmul.f32 %v994_v36, %v873_v37 }
 0x1e1   : > { %712 = vadd.xlane.f32.xlu1 %v711_v38 }
 0x1e2   : > { %v708_v40 = vsel %vm707_vm3, %v706_v39, 0.0 }
 0x1e3   : > { %709 = vadd.xlane.f32.xlu0 %v708_v40 }
 0x26e   : > { %v713_v42 = vpop.xlane.xlu1 %712 }
 0x26f   : > { %v723_v45 = vrot.slane %v713_v42, %v716_v41 }
 0x270   : > { %v710_v43 = vpop.xlane.xlu0 %709 }
 0x271   : > { %v717_v44 = vrot.slane %v710_v43, %v716_v41 }
 0x273   : > { %v718_v46 = vmul.f32 %v717_v44, %v1271_v0 }
 0x275   : > { %v724_v47 = vmul.f32 %v723_v45, %v718_v46  ;;  %719 = vst [vmem:[%s217_s20] sm:$0xff] %v718_v46 }
 0x276   : > { %1038 = shalt.err (!%p1035_p4)
}
 0x277   : > { %s1039_s14 = scalar_lea.hbm %s1301_s5, 128  ;;  %s1043_s30 = scalar_lea.hbm %s1379_s3, 256 }
 0x278   : > { %p1040_p5 = scmp.ne.s32.totalorder %s1301_s5, %s1039_s14  ;;  %p1044_p0 = scmp.lt.u32.totalorder %s1301_s5, %s1379_s3 }
 0x279   : > { %p1045_p1 = scmp.lt.u32.totalorder %s1043_s30, %s1039_s14  ;;  %p1047_p6 = scmp.lt.u32.totalorder %s1039_s14, %s1301_s5 }
 0x27a   : > { %p1041_p8 = pnand %p1040_p5, %p1389_p11 }
 0x27b   : > { %p1046_p3 = por %p1045_p1, %p1044_p0 }
 0x27c   : > { %p1042_p9 = pneg %p1041_p8 }
 0x27d   : > { %p1048_p12 = por %p1047_p6, %p1046_p3 }
 0x27f   : > { %p1049_p13 = pnand %p1048_p12, %p1042_p9 }
 0x281   : > { %1052 = shalt.err (!%p1049_p13)
}
 0x282   : > { %939 = dma.vmem_to_hbm [thread:$0]  (%p1389_p11), %s1303_s22, 128, %s1301_s5, %s727_s11   ;;  %725 = vst [vmem:[%s224_s23] sm:$0xff] %v724_v47 }
 0x283   : > { %s732_s8 = scalar_lea.sflag [#allocation7], %s1260_s7  ;;  %s1053_s10 = scalar_lea.vmem %s1310_s25, 128 }
 0x284   : > { %p1054_p7 = scmp.ne.s32.totalorder %s1310_s25, %s1053_s10  ;;  %s1129_s26 = smov [#allocation6]  }
 0x285   : > { %s1057_s12 = sshll.u32 %s1129_s26, 4  ;;  %s1058_s12 = int_to_ptr.vmem [resolvable:$false] %s1057_s12 }
 0x286   : > { %p1055_p10 = pnand %p1054_p7, %p1389_p11  ;;  %s1059_s14 = scalar_lea.vmem %s1058_s12, 256 }
 0x287   : > { %p1060_p4 = scmp.lt.s32.totalorder %s1310_s25, %s1058_s12  ;;  %p1061_p5 = scmp.lt.s32.totalorder %s1059_s14, %s1053_s10 }
 0x288   : > { %p1056_p2 = pneg %p1055_p10 }
 0x289   : > { %p1062_p8 = por %p1061_p5, %p1060_p4 }
 0x28b   : > { %p1063_p9 = pnand %p1062_p8, %p1056_p2 }
 0x28d   : > { %1066 = shalt.err (!%p1063_p9)
}
 0x28e   : > { %s1067_s7 = scalar_lea.hbm %s1308_s13, 128  ;;  %s1071_s23 = scalar_lea.hbm %s1380_s4, 256 }
 0x28f   : > { %p1068_p0 = scmp.ne.s32.totalorder %s1308_s13, %s1067_s7  ;;  %p1072_p6 = scmp.lt.u32.totalorder %s1308_s13, %s1380_s4 }
 0x290   : > { %p1073_p12 = scmp.lt.u32.totalorder %s1071_s23, %s1067_s7  ;;  %p1075_p7 = scmp.lt.u32.totalorder %s1067_s7, %s1308_s13 }
 0x291   : > { %p1069_p1 = pnand %p1068_p0, %p1389_p11 }
 0x292   : > { %p1074_p13 = por %p1073_p12, %p1072_p6 }
 0x293   : > { %p1070_p3 = pneg %p1069_p1 }
 0x294   : > { %p1076_p10 = por %p1075_p7, %p1074_p13 }
 0x296   : > { %p1077_p2 = pnand %p1076_p10, %p1070_p3 }
 0x298   : > { %1080 = shalt.err (!%p1077_p2)
}
 0x299   : > { %940 = dma.vmem_to_hbm [thread:$0]  (%p1389_p11), %s1310_s25, 128, %s1308_s13, %s732_s8  }
 0x29a PF: > { %s772_s20 = sand.u32 1, %s1111_s15   ;;  %p1390_p4 = scmp.ne.s32.totalorder %s1385_s28, 0 }
 0x29b   : > { %p1391_p5 = scmp.ge.s32.totalorder %s1123_s18, 2  ;;  %s773_s29 = scalar_lea.sflag [#allocation4], %s772_s20 }
 0x29d   : > { %p948_p8 = pnand %p1391_p5, %p1390_p4 }
 0x29f   : > { %1102 = dma.done.wait (!%p948_p8), %s773_s29, 128  }
 0x2a0   : > { %1104 = vsyncadd (!%p948_p8), %s773_s29, 4294967168  ;;  %s782_s30 = scalar_lea.sflag [#allocation7], %s772_s20 }
 0x2a1   : > { %1106 = dma.done.wait (!%p948_p8), %s782_s30, 128  }
 0x2a2   : > { %1108 = vsyncadd (!%p948_p8), %s782_s30, 4294967168  ;;  %p21_p11 = scmp.ge.s32.totalorder %s1180_s21, 4   ;;  %s1392_s15 = smov %s1115_s16 }
 0x2a3   : > { %s1393_s16 = smov %s1119_s17  ;;  %s1394_s17 = smov %s1192_s24 }
 0x2a4   : > { %s1395_s18 = smov %s1180_s21  ;;  %23 = sbr.rel (!%p21_p11) target bundleno = 7 (0x7), region = 94 }
 0x2ab   :  { %787 = vsyncpa [#allocation3], 1 }
 0x2ac   :  { %789 = vsyncpa [#allocation3 + $0x1], 1 }
 0x2ad   :  { %790 = vsyncpa [#allocation4], 1 }
 0x2ae   :  { %792 = vsyncpa [#allocation4 + $0x1], 1 }
 0x2af   :  { %793 = vsyncpa [#allocation7], 1 }
 0x2b0   :  { %795 = vsyncpa [#allocation7 + $0x1], 1 }

</bundles_post_ra>
